<compile_context>
chip_gen: v6e
topology: v6e:2x2x1
jax: 0.10.0
libtpu: 0.0.40
codegen_flags: <defaults>
</compile_context>

<pallas_src>
import jax
import jax.numpy as jnp
import numpy as np
from jax.experimental import pallas as pl
from jax.experimental.pallas import tpu as pltpu


def attention_kernel(vi_ref, vq_ref, wi_ref, bi_ref, wq_ref, bq_ref,
                     wa_ref, ba_ref, out_ref):
    tb, r, d = vi_ref.shape          # d is already lane-padded to a 128 multiple
    k = wi_ref.shape[1]

    vi = vi_ref[...]                 # (TB, R, D)  bf16
    vq = vq_ref[...]                 # (TB, D)     f32 (residual kept exact)

    # ff_image / ff_ques: single fused MXU matmuls, f32 accumulation.
    hi = jnp.dot(vi.reshape(tb * r, d), wi_ref[...],
                 preferred_element_type=jnp.float32) + bi_ref[...]        # (TB*R, K)
    hq = jnp.dot(vq.astype(wq_ref.dtype), wq_ref[...],
                 preferred_element_type=jnp.float32) + bq_ref[...]        # (TB, K)

    ha = jnp.tanh(hi.reshape(tb, r, k) + hq[:, None, :])                  # (TB, R, K) f32
    # dropout(p=0.5) is identity in eval mode.

    # ff_attention as an MXU GEMV: (TB*R, K) @ (K, 1) + scalar bias (SMEM).
    a = jnp.dot(ha.reshape(tb * r, k), wa_ref[...],
                preferred_element_type=jnp.float32)                        # (TB*R, 1)
    a = a.reshape(tb, r) + ba_ref[0]                                       # (TB, R)

    # softmax over the region axis (dim=1 in the torch module).
    a = a - jnp.max(a, axis=-1, keepdims=True)
    e = jnp.exp(a)
    pi = e * pl.reciprocal(jnp.sum(e, axis=-1, keepdims=True), approx=True)  # (TB, R)

    # attended sum as a batched MXU contraction: (TB,1,R) x (TB,R,D) -> (TB,1,D)
    att = jnp.einsum('bqr,brd->bqd', pi.astype(vi.dtype)[:, None, :], vi,
                     preferred_element_type=jnp.float32).reshape(tb, d)

    out_ref[...] = (att + vq.astype(jnp.float32)).astype(out_ref.dtype)


def _pick_batch_tile(B, R, target_rows=512):
    """Pick TB so TB*R ~ target_rows (fills MXU / approaches HBM roofline).

    TB must divide B and (TB == B or TB % 8 == 0) to satisfy the (8,128)
    block constraint on the (TB, D) vq/out blocks.
    """
    tb_target = max(1, target_rows // max(R, 1))
    if B <= tb_target:
        return B
    for tb in range(min(tb_target, B), 0, -1):
        if B % tb == 0 and (tb == B or tb % 8 == 0):
            return tb
    return B   # no suitable divisor: fall back to the whole batch in one step


def san_attention(vi, vq, params, *, target_rows=512):
    """vi: (B, R, D) float32, vq: (B, D) float32 -> (B, D) float32."""
    B, R, D = vi.shape
    K = params["wi"].shape[1]

    # Lane-dense feature dim (unmasked vector stores). Zero padding of the
    # input-feature axis leaves hi/hq and the attended sum unchanged.
    D_pad = ((D + 127) // 128) * 128
    wi, wq = params["wi"], params["wq"]
    if D_pad != D:
        pad = D_pad - D
        vi = jnp.pad(vi, ((0, 0), (0, 0), (0, pad)))
        vq = jnp.pad(vq, ((0, 0), (0, pad)))
        wi = jnp.pad(wi, ((0, pad), (0, 0)))
        wq = jnp.pad(wq, ((0, pad), (0, 0)))

    # bf16 for the streamed activations and the big (D,K) weights (MXU inputs);
    # accumulation and all tanh/softmax math stay in f32 inside the kernel.
    vi = vi.astype(jnp.bfloat16)
    wi = wi.astype(jnp.bfloat16)
    wq = wq.astype(jnp.bfloat16)
    vq = vq.astype(jnp.float32)

    bi = params["bi"].reshape(1, K).astype(jnp.float32)
    bq = params["bq"].reshape(1, K).astype(jnp.float32)
    wa = params["wa"].reshape(K, 1).astype(jnp.float32)
    ba = params["ba"].reshape(1,).astype(jnp.float32)

    TB = _pick_batch_tile(B, R, target_rows)
    grid = (B // TB,)

    # NOTE(v7x): for production D/K, the constant-index (D,K) weight blocks are
    # double-buffered by the pipeline; budget VMEM (vmem_limit_bytes) and/or
    # shrink TB if the tile set approaches the 64 MiB physical VMEM.
    out = pl.pallas_call(
        attention_kernel,
        out_shape=jax.ShapeDtypeStruct((B, D_pad), jnp.float32),
        grid_spec=pltpu.PrefetchScalarGridSpec(
            num_scalar_prefetch=0,
            grid=grid,
            in_specs=[
                pl.BlockSpec((TB, R, D_pad), lambda g: (g, 0, 0)),   # vi (batch tile)
                pl.BlockSpec((TB, D_pad),    lambda g: (g, 0)),      # vq (batch tile)
                pl.BlockSpec((D_pad, K),     lambda g: (0, 0)),      # Wi
                pl.BlockSpec((1, K),         lambda g: (0, 0)),      # bi
                pl.BlockSpec((D_pad, K),     lambda g: (0, 0)),      # Wq
                pl.BlockSpec((1, K),         lambda g: (0, 0)),      # bq
                pl.BlockSpec((K, 1),         lambda g: (0, 0)),      # wa (column)
                pl.BlockSpec(memory_space=pltpu.MemorySpace.SMEM),   # ba (scalar)
            ],
            out_specs=pl.BlockSpec((TB, D_pad), lambda g: (g, 0)),
        ),
        compiler_params=pltpu.CompilerParams(
            dimension_semantics=("parallel",)),   # batch axis splits across TCs on v7x
    )(vi, vq, wi, bi, wq, bq, wa, ba)

    return out[:, :D]


def init_params(key, d, k):
    """Deterministic nn.Linear-style init (uniform(-1/sqrt(fan_in), +1/sqrt(fan_in)))."""
    ks = jax.random.split(key, 6)
    bd, bk = 1.0 / np.sqrt(d), 1.0 / np.sqrt(k)
    return {
        # stored pre-transposed as (in, out) so the kernel does x @ W
        "wi": jax.random.uniform(ks[0], (d, k), jnp.float32, -bd, bd),
        "bi": jax.random.uniform(ks[1], (k,),   jnp.float32, -bd, bd),
        "wq": jax.random.uniform(ks[2], (d, k), jnp.float32, -bd, bd),
        "bq": jax.random.uniform(ks[3], (k,),   jnp.float32, -bd, bd),
        "wa": jax.random.uniform(ks[4], (k,),   jnp.float32, -bk, bk),
        "ba": jax.random.uniform(ks[5], (1,),   jnp.float32, -bk, bk),
    }


def san_attention_ref(vi, vq, p):
    """Pure-JAX f32 reference mirroring the PyTorch forward (eval mode)."""
    hi = vi @ p["wi"] + p["bi"]                       # (B, R, K)
    hq = (vq @ p["wq"] + p["bq"])[:, None, :]         # (B, 1, K)
    ha = jnp.tanh(hi + hq)
    a = jnp.sum(ha * p["wa"], axis=-1) + p["ba"][0]   # (B, R)
    pi = jax.nn.softmax(a, axis=1)
    vi_att = jnp.sum(pi[:, :, None] * vi, axis=1)     # (B, D)
    return vi_att + vq


if __name__ == "__main__":
    B, R, D, K = 2, 8, 32, 16   # small shapes consistent with Attention(d=D, k=K)

    key = jax.random.PRNGKey(0)
    k_vi, k_vq, k_p = jax.random.split(key, 3)
    vi = jax.random.normal(k_vi, (B, R, D), jnp.float32)
    vq = jax.random.normal(k_vq, (B, D), jnp.float32)
    params = init_params(k_p, D, K)

    out = san_attention(vi, vq, params)
    out = jax.block_until_ready(out)

    ref = san_attention_ref(vi, vq, params)
    # Tolerance loosened vs f32 reference: kernel streams vi / Wi / Wq in bf16
    # (f32 accumulation) and uses the approx EUP reciprocal in the softmax.
    np.testing.assert_allclose(np.asarray(out), np.asarray(ref), rtol=2e-2, atol=5e-2)

    print("KERNEL_OK")
</pallas_src>

<mosaic_0001>
module attributes {stable_mosaic.version = 11 : i64} {
  func.func @attention_kernel(%arg0: i32, %arg1: memref<2x8x128xbf16, #tpu.memory_space<vmem>>, %arg2: memref<2x128xf32, #tpu.memory_space<vmem>>, %arg3: memref<128x16xbf16, #tpu.memory_space<vmem>>, %arg4: memref<1x16xf32, #tpu.memory_space<vmem>>, %arg5: memref<128x16xbf16, #tpu.memory_space<vmem>>, %arg6: memref<1x16xf32, #tpu.memory_space<vmem>>, %arg7: memref<16x1xf32, #tpu.memory_space<vmem>>, %arg8: memref<1xf32, #tpu.memory_space<smem>>, %arg9: memref<2x128xf32, #tpu.memory_space<vmem>>) attributes {dimension_semantics = [#tpu.dimension_semantics<parallel>], iteration_bounds = array<i64: 1>, scalar_prefetch = 0 : i64, scratch_operands = 0 : i64, tpu.core_type = #tpu.core_type<tc>, window_params = [{transform_indices = @transform_0, window_bounds = array<i64: 2, 8, 128>}, {transform_indices = @transform_1, window_bounds = array<i64: 2, 128>}, {pipeline_mode = #tpu.pipeline_mode<synchronous>, transform_indices = @transform_2, window_bounds = array<i64: 128, 16>}, {pipeline_mode = #tpu.pipeline_mode<synchronous>, transform_indices = @transform_3, window_bounds = array<i64: 1, 16>}, {pipeline_mode = #tpu.pipeline_mode<synchronous>, transform_indices = @transform_4, window_bounds = array<i64: 128, 16>}, {pipeline_mode = #tpu.pipeline_mode<synchronous>, transform_indices = @transform_5, window_bounds = array<i64: 1, 16>}, {pipeline_mode = #tpu.pipeline_mode<synchronous>, transform_indices = @transform_6, window_bounds = array<i64: 16, 1>}, {transform_indices = @transform_7, window_bounds = array<i64: 1>}, {transform_indices = @transform_8, window_bounds = array<i64: 2, 128>}]} {
    %c0 = arith.constant 0 : index
    %c0_0 = arith.constant 0 : index
    %c0_1 = arith.constant 0 : index
    %0 = vector.load %arg1[%c0, %c0_0, %c0_1] : memref<2x8x128xbf16, #tpu.memory_space<vmem>>, vector<2x8x128xbf16>
    %c0_2 = arith.constant 0 : index
    %c0_3 = arith.constant 0 : index
    %1 = vector.load %arg2[%c0_2, %c0_3] : memref<2x128xf32, #tpu.memory_space<vmem>>, vector<2x128xf32>
    %2 = vector.shape_cast %0 : vector<2x8x128xbf16> to vector<16x128xbf16>
    %c0_4 = arith.constant 0 : index
    %c0_5 = arith.constant 0 : index
    %3 = vector.load %arg3[%c0_4, %c0_5] : memref<128x16xbf16, #tpu.memory_space<vmem>>, vector<128x16xbf16>
    %cst = arith.constant dense<0.000000e+00> : vector<16x16xf32>
    %4 = tpu.matmul %2, %3, %cst {dimension_numbers = #tpu.dot_dimension_numbers<[1], [0], [0], [1], [0, 0, 1, 1], [], []>} : vector<16x128xbf16>, vector<128x16xbf16>, vector<16x16xf32> -> vector<16x16xf32>
    %c0_6 = arith.constant 0 : index
    %c0_7 = arith.constant 0 : index
    %5 = vector.load %arg4[%c0_6, %c0_7] : memref<1x16xf32, #tpu.memory_space<vmem>>, vector<1x16xf32>
    %6 = vector.broadcast %5 : vector<1x16xf32> to vector<16x16xf32>
    %7 = arith.addf %4, %6 : vector<16x16xf32>
    %8 = arith.truncf %1 : vector<2x128xf32> to vector<2x128xbf16>
    %c0_8 = arith.constant 0 : index
    %c0_9 = arith.constant 0 : index
    %9 = vector.load %arg5[%c0_8, %c0_9] : memref<128x16xbf16, #tpu.memory_space<vmem>>, vector<128x16xbf16>
    %cst_10 = arith.constant dense<0.000000e+00> : vector<2x16xf32>
    %10 = tpu.matmul %8, %9, %cst_10 {dimension_numbers = #tpu.dot_dimension_numbers<[1], [0], [0], [1], [0, 0, 1, 1], [], []>} : vector<2x128xbf16>, vector<128x16xbf16>, vector<2x16xf32> -> vector<2x16xf32>
    %c0_11 = arith.constant 0 : index
    %c0_12 = arith.constant 0 : index
    %11 = vector.load %arg6[%c0_11, %c0_12] : memref<1x16xf32, #tpu.memory_space<vmem>>, vector<1x16xf32>
    %12 = vector.broadcast %11 : vector<1x16xf32> to vector<2x16xf32>
    %13 = arith.addf %10, %12 : vector<2x16xf32>
    %14 = vector.shape_cast %7 : vector<16x16xf32> to vector<2x8x16xf32>
    %15 = vector.shape_cast %13 : vector<2x16xf32> to vector<2x1x16xf32>
    %16 = vector.broadcast %15 : vector<2x1x16xf32> to vector<2x8x16xf32>
    %17 = arith.addf %14, %16 : vector<2x8x16xf32>
    %18 = math.tanh %17 : vector<2x8x16xf32>
    %19 = vector.shape_cast %18 : vector<2x8x16xf32> to vector<16x16xf32>
    %c0_13 = arith.constant 0 : index
    %c0_14 = arith.constant 0 : index
    %20 = vector.load %arg7[%c0_13, %c0_14] : memref<16x1xf32, #tpu.memory_space<vmem>>, vector<16x1xf32>
    %cst_15 = arith.constant dense<0.000000e+00> : vector<16x1xf32>
    %21 = tpu.matmul %19, %20, %cst_15 {dimension_numbers = #tpu.dot_dimension_numbers<[1], [0], [0], [1], [0, 0, 1, 1], [], []>} : vector<16x16xf32>, vector<16x1xf32>, vector<16x1xf32> -> vector<16x1xf32>
    %22 = vector.shape_cast %21 : vector<16x1xf32> to vector<2x8xf32>
    %c0_16 = arith.constant 0 : index
    %23 = memref.load %arg8[%c0_16] : memref<1xf32, #tpu.memory_space<smem>>
    %24 = vector.broadcast %23 : f32 to vector<2x8xf32>
    %25 = arith.addf %22, %24 : vector<2x8xf32>
    %cst_17 = arith.constant dense<0xFF800000> : vector<2xf32>
    %26 = vector.multi_reduction <maximumf>, %25, %cst_17 [1] : vector<2x8xf32> to vector<2xf32>
    %27 = vector.shape_cast %26 : vector<2xf32> to vector<2x1xf32>
    %28 = vector.broadcast %27 : vector<2x1xf32> to vector<2x8xf32>
    %29 = arith.subf %25, %28 : vector<2x8xf32>
    %30 = math.exp %29 : vector<2x8xf32>
    %cst_18 = arith.constant dense<0.000000e+00> : vector<2xf32>
    %31 = vector.multi_reduction <add>, %30, %cst_18 [1] : vector<2x8xf32> to vector<2xf32>
    %32 = vector.shape_cast %31 : vector<2xf32> to vector<2x1xf32>
    %33 = tpu.reciprocal %32 {approx = true} : vector<2x1xf32> -> vector<2x1xf32>
    %34 = vector.broadcast %33 : vector<2x1xf32> to vector<2x8xf32>
    %35 = arith.mulf %30, %34 : vector<2x8xf32>
    %36 = arith.truncf %35 : vector<2x8xf32> to vector<2x8xbf16>
    %37 = vector.shape_cast %36 : vector<2x8xbf16> to vector<2x1x8xbf16>
    "tpu.trace_start"() <{level = 10 : i32, message = "bqr,brd->bqd"}> : () -> ()
    %cst_19 = arith.constant dense<0.000000e+00> : vector<2x1x128xf32>
    %38 = tpu.matmul %37, %0, %cst_19 {dimension_numbers = #tpu.dot_dimension_numbers<[2], [1], [1], [2], [0, 0, 0, 1, 1, 2], [0], [0]>} : vector<2x1x8xbf16>, vector<2x8x128xbf16>, vector<2x1x128xf32> -> vector<2x1x128xf32>
    "tpu.trace_stop"() : () -> ()
    %39 = vector.shape_cast %38 : vector<2x1x128xf32> to vector<2x128xf32>
    %40 = arith.addf %39, %1 : vector<2x128xf32>
    %c0_20 = arith.constant 0 : index
    %c0_21 = arith.constant 0 : index
    %41 = vector.load %arg9[%c0_20, %c0_21] : memref<2x128xf32, #tpu.memory_space<vmem>>, vector<2x128xf32>
    tpu.vector_store %arg9[%c0_20, %c0_21], %40 {strides = array<i32>} : memref<2x128xf32, #tpu.memory_space<vmem>>, vector<2x128xf32>,
    return
  }
  func.func @transform_0(%arg0: i32) -> (i32, i32, i32) {
    %c0_i32 = arith.constant 0 : i32
    %c0_i32_0 = arith.constant 0 : i32
    %c0_i32_1 = arith.constant 0 : i32
    return %arg0, %c0_i32, %c0_i32_0 : i32, i32, i32
  }
  func.func @transform_1(%arg0: i32) -> (i32, i32) {
    %c0_i32 = arith.constant 0 : i32
    %c0_i32_0 = arith.constant 0 : i32
    return %arg0, %c0_i32 : i32, i32
  }
  func.func @transform_2(%arg0: i32) -> (i32, i32) {
    %c0_i32 = arith.constant 0 : i32
    %c0_i32_0 = arith.constant 0 : i32
    %c0_i32_1 = arith.constant 0 : i32
    return %c0_i32, %c0_i32_0 : i32, i32
  }
  func.func @transform_3(%arg0: i32) -> (i32, i32) {
    %c0_i32 = arith.constant 0 : i32
    %c0_i32_0 = arith.constant 0 : i32
    %c0_i32_1 = arith.constant 0 : i32
    return %c0_i32, %c0_i32_0 : i32, i32
  }
  func.func @transform_4(%arg0: i32) -> (i32, i32) {
    %c0_i32 = arith.constant 0 : i32
    %c0_i32_0 = arith.constant 0 : i32
    %c0_i32_1 = arith.constant 0 : i32
    return %c0_i32, %c0_i32_0 : i32, i32
  }
  func.func @transform_5(%arg0: i32) -> (i32, i32) {
    %c0_i32 = arith.constant 0 : i32
    %c0_i32_0 = arith.constant 0 : i32
    %c0_i32_1 = arith.constant 0 : i32
    return %c0_i32, %c0_i32_0 : i32, i32
  }
  func.func @transform_6(%arg0: i32) -> (i32, i32) {
    %c0_i32 = arith.constant 0 : i32
    %c0_i32_0 = arith.constant 0 : i32
    %c0_i32_1 = arith.constant 0 : i32
    return %c0_i32, %c0_i32_0 : i32, i32
  }
  func.func @transform_7(%arg0: i32) -> i32 {
    %c0_i32 = arith.constant 0 : i32
    %c0_i32_0 = arith.constant 0 : i32
    return %c0_i32 : i32
  }
  func.func @transform_8(%arg0: i32) -> (i32, i32) {
    %c0_i32 = arith.constant 0 : i32
    %c0_i32_0 = arith.constant 0 : i32
    return %arg0, %c0_i32 : i32, i32
  }
}

</mosaic_0001>

<bundles_post_ra>
// kernel: tpu_custom_call.1
= control target key start
LH: loop header
LB: loop body
LE: loop exit
PB: predicated region body
PF: predicated region fallthrough
CT: control target
= control target key end

     0   :  { %v773_v1 = vmov 0.0   ;;  %vm774_vm0 = vmmov 0   ;;  %s955_s0 = inlined_call_operand.vmem [shape: bf16[2,8,128], index: 0, kind: input, shape index: {}]   ;;  %s956_s1 = inlined_call_operand.vmem [shape: f32[2,128], index: 1, kind: input, shape index: {}]   ;;  %s957_s2 = inlined_call_operand.vmem [shape: bf16[128,16], index: 2, kind: input, shape index: {}]   ;;  %s958_s3 = inlined_call_operand.vmem [shape: f32[1,16], index: 3, kind: input, shape index: {}]   ;;  %s959_s4 = inlined_call_operand.vmem [shape: bf16[128,16], index: 4, kind: input, shape index: {}]   ;;  %s960_s5 = inlined_call_operand.vmem [shape: f32[1,16], index: 5, kind: input, shape index: {}]   ;;  %s961_s6 = inlined_call_operand.vmem [shape: f32[16,1], index: 6, kind: input, shape index: {}]   ;;  %s962_s7 = inlined_call_operand.<no memory space> [shape: f32[1], index: 7, kind: input, shape index: {}]   ;;  %s963_s8 = inlined_call_operand.hbm [shape: f32[2,128], index: 8, kind: output, shape index: {}]  }
   0x1   :  { %v724_v0 = vld [vmem:[%s957_s2 + $0x38] sm:$0xff]   ;;  %658 = vmatprep.subr.bf16.mxu0 %v773_v1  ;;  %678 = vmatprep.subr.bf16.mxu1 %v773_v1  ;;  %v726_v3 = vld [vmem:[%s957_s2 + $0x30] sm:$0xff]   ;;  %v728_v5 = vld [vmem:[%s957_s2 + $0x28] sm:$0xff]  }
   0x2   :  { %v725_v2 = vld [vmem:[%s959_s4 + $0x38] sm:$0xff]   ;;  %659 = vmatpush3.bf16.msra.mxu0 %v724_v0  ;;  %674 = vmatprep.mubr.msk.bf16.mxu0 %vm774_vm0, %v773_v1  ;;  %v727_v4 = vld [vmem:[%s959_s4 + $0x30] sm:$0xff]   ;;  %v729_v6 = vld [vmem:[%s959_s4 + $0x28] sm:$0xff]  }
   0x3   :  { %679 = vmatpush3.bf16.msra.mxu1 %v725_v2  ;;  %660 = vmatprep.subr.bf16.mxu0 %v773_v1  ;;  %v730_v7 = vld [vmem:[%s957_s2 + $0x20] sm:$0xff]   ;;  %v732_v9 = vld [vmem:[%s957_s2 + $0x18] sm:$0xff]  }
   0x4   :  { %680 = vmatprep.subr.bf16.mxu1 %v773_v1  ;;  %694 = vmatprep.mubr.msk.bf16.mxu1 %vm774_vm0, %v773_v1  ;;  %v731_v8 = vld [vmem:[%s959_s4 + $0x20] sm:$0xff]   ;;  %v733_v10 = vld [vmem:[%s959_s4 + $0x18] sm:$0xff]  }
   0x6   :  { %661 = vmatpush3.bf16.msra.mxu0 %v726_v3 }
   0x7   :  { %681 = vmatpush3.bf16.msra.mxu1 %v727_v4  ;;  %662 = vmatprep.subr.bf16.mxu0 %v773_v1 }
   0x8   :  { %682 = vmatprep.subr.bf16.mxu1 %v773_v1 }
   0xa   :  { %663 = vmatpush3.bf16.msra.mxu0 %v728_v5 }
   0xb   :  { %683 = vmatpush3.bf16.msra.mxu1 %v729_v6  ;;  %664 = vmatprep.subr.bf16.mxu0 %v773_v1 }
   0xc   :  { %684 = vmatprep.subr.bf16.mxu1 %v773_v1 }
   0xe   :  { %665 = vmatpush3.bf16.msra.mxu0 %v730_v7 }
   0xf   :  { %685 = vmatpush3.bf16.msra.mxu1 %v731_v8  ;;  %666 = vmatprep.subr.bf16.mxu0 %v773_v1 }
  0x10   :  { %686 = vmatprep.subr.bf16.mxu1 %v773_v1 }
  0x11   :  { %14 = vsyncpa [#allocation4], 0  ;;  %v734_v11 = vld [vmem:[%s957_s2 + $0x10] sm:$0xff]   ;;  %v736_v13 = vld [vmem:[%s957_s2 + $0x8] sm:$0xff]   ;;  %v775_v24 = vmov 1966171168   ;;  %v269_v26 = vlaneseq  ;;  %v387_v56 = vstv %s962_s7 }
  0x12   :  { %667 = vmatpush3.bf16.msra.mxu0 %v732_v9  ;;  %v735_v12 = vld [vmem:[%s959_s4 + $0x10] sm:$0xff]   ;;  %v737_v14 = vld [vmem:[%s959_s4 + $0x8] sm:$0xff]   ;;  %v738_v15 = vld [vmem:[%s957_s2] sm:$0xff]   ;;  %v267_v25 = vunpack.c.l.s4 %v775_v24  ;;  %vm304_vm1 = vcmask 130048   ;;  %v776_v54 = vmov 0   ;;  %vm408_vm2 = vcmask 1041409  }
  0x13   :  { %687 = vmatpush3.bf16.msra.mxu1 %v733_v10  ;;  %668 = vmatprep.subr.bf16.mxu0 %v773_v1  ;;  %v889_v16 = vld [vmem:[%s955_s0] sm:$0xf]  ;;  %v894_v17 = vld [vmem:[%s955_s0 + $0x4] sm:$0xf]  ;;  %v303_v22 = vld [vmem:[%s961_s6 + $0x8] sm:$0xff]  ;;  %v920_v28 = vshrl.u32 %v269_v26, 7 }
  0x14   :  { %688 = vmatprep.subr.bf16.mxu1 %v773_v1  ;;  %v739_v18 = vld [vmem:[%s959_s4] sm:$0xff]   ;;  %v610_v20 = vcombine.low %v889_v16, %v894_v17  ;;  %v268_v27 = vunpack.c.0.s8 %v267_v25  ;;  %722 = vset.pattern.permute.xlu0 %v776_v54  ;;  %v399_v60 = vand.u32 127, %v269_v26  ;;  %vm411_vm3 = vcmask 58368   ;;  %s777_s7 = smov [#allocation3]  }
  0x15   :  { %v903_v19 = vld [vmem:[%s956_s1] sm:$0x3]  ;;  %v927_v37 = vsub.s32 0, %v920_v28  ;;  %723 = vset.pattern.permute.xlu1 %v776_v54  ;;  %v422_v4 = vsub.s32 1, %v920_v28  ;;  %vm483_vm4 = vcmask 1043456   ;;  %vm479_vm5 = vcmask 64512  }
  0x16   :  { %669 = vmatpush3.bf16.msra.mxu0 %v734_v11  ;;  %v153_v21 = vpack.c.bf16 %v903_v19, %v903_v19  ;;  %v302_v23 = vld [vmem:[%s961_s6] sm:$0xff]  ;;  %v271_v31 = vsub.s32 %v268_v27, %v920_v28  ;;  %v402_v62 = vsub.s32 %v399_v60, %v920_v28  ;;  %s601_s24 = sshll.u32 %s777_s7, 4  ;;  %s602_s24 = int_to_ptr.vmem [resolvable:$true] %s601_s24 }
  0x17   :  { %689 = vmatpush3.bf16.msra.mxu1 %v735_v12  ;;  %670 = vmatprep.subr.bf16.mxu0 %v773_v1  ;;  %v619_v29 = vld [vmem:[%s960_s5] ss:$0 sm:$0xff]  ;;  %s751_s25 = scalar_lea.vmem %s602_s24, 32  ;;  %p756_p1 = scmp.lt.s32.totalorder %s602_s24, %s602_s24 }
  0x18   :  { %690 = vmatprep.subr.bf16.mxu1 %v773_v1  ;;  %v609_v39 = vld [vmem:[%s958_s3] ss:$0 sm:$0xff]  ;;  %p752_p0 = scmp.ne.s32.totalorder %s602_s24, %s751_s25  ;;  %p757_p2 = scmp.lt.s32.totalorder %s751_s25, %s751_s25 }
  0x1a   :  { %671 = vmatpush3.bf16.msra.mxu0 %v736_v13  ;;  %p758_p3 = por %p757_p2, %p756_p1 }
  0x1b   :  { %691 = vmatpush3.bf16.msra.mxu1 %v737_v14  ;;  %672 = vmatprep.subr.bf16.mxu0 %v773_v1 }
  0x1c   :  { %692 = vmatprep.subr.bf16.mxu1 %v773_v1  ;;  %p759_p4 = pnand %p758_p3, %p752_p0 }
  0x1e   :  { %673 = vmatpush3.bf16.msra.mxu0 %v738_v15 }
  0x1f   :  { %693 = vmatpush3.bf16.msra.mxu1 %v739_v18  ;;  %698 = vmatprep.subr.mxu0 %v303_v22 }
  0x20   :  { %705 = vmatprep.subr.bf16.mxu1 %v773_v1 }
  0x21   :  { %675 = vmatmul.mubr.bf16.vlgmr.msra.gmra.mxu0 %v610_v20 }
  0x22   :  { %695 = vmatmul.mubr.bf16.vlgmr.msra.gmra.mxu1 %v153_v21  ;;  %699 = vmatpush3.msra.mxu0 %v303_v22 }
  0x23   :  { %707 = vmatprep.mubr.msk.bf16.mxu1 %vm774_vm0, %v773_v1  ;;  %700 = vmatprep.subr.mxu0 %v302_v23 }
  0x24   :  { %701 = vmatpush3.msra.mxu0 %v302_v23 }
  0x25   :  { %711 = vmatprep.subr.bf16.mxu0 %v773_v1 }
  0xe1   :  { %v146_v30 = vpop.f32.mrf.mxu0 }
  0xe2   :  { %v259_v32 = vpop.f32.mrf.mxu1  ;;  %v147_v45 = vadd.f32 %v609_v39, %v146_v30  ;;  %v541_v30 = vsel %vm483_vm4, %v894_v17, 0  ;;  %v584_v17 = vrot.slane %v903_v19, 1 }
  0xe3   :  { %v260_v33 = vadd.f32 %v619_v29, %v259_v32  ;;  %v676_v34 = vpop.f32.mrf.mxu0 }
  0xe4   :  { %v696_v35 = vpop.f32.mrf.mxu1 }
  0xe5   :  { %v272_v36 = vrot.slane %v260_v33, %v271_v31  ;;  %v149_v38 = vpop.f32.mrf.mxu0  ;;  %v485_v33 = vsel %vm483_vm4, %v889_v16, 0 }
  0xe6   :  { %v262_v40 = vpop.f32.mrf.mxu1  ;;  %v150_v49 = vadd.f32 %v609_v39, %v149_v38  ;;  %706 = vmatpush3.bf16.msra.mxu1 %v485_v33 }
  0xe7   :  { %v273_v41 = vcombine.high %v272_v36, %v272_v36  ;;  %v280_v42 = vrot.slane %v272_v36, %v271_v31  ;;  %v677_v43 = vpop.f32.mrf.mxu0 }
  0xe8   :  { %v697_v44 = vpop.f32.mrf.mxu1 }
  0xe9   :  { %v291_v46 = vrot.slane %v280_v42, %v927_v37  ;;  %v287_v47 = vrot.slane %v273_v41, %v271_v31 }
  0xeb   :  { %v298_v48 = vadd.f32 %v291_v46, %v147_v45  ;;  %v295_v50 = vrot.slane %v287_v47, %v927_v37 }
  0xed   :  { %741 = vtanh.f32 %v298_v48  ;;  %v299_v51 = vadd.f32 %v295_v50, %v150_v49 }
  0xef   :  { %743 = vtanh.f32 %v299_v51 }
  0xfa   :  { %v742_v52 = vpop.eup %741 }
  0xfb   :  { %702 = vmatprep.mubr.msk.f32.mxu0 %vm304_vm1, %v742_v52 }
  0xfc   :  { %v744_v53 = vpop.eup %743 }
  0xfd   :  { %703 = vmatmul.mubr.msk.f32.vlgmr.msra.gmra.mxu0 %vm304_vm1, %v744_v53 }
  0xfe   :  { %713 = vmatprep.mubr.msk.bf16.mxu0 %vm774_vm0, %v773_v1  ;;  %712 = vmatpush3.bf16.msra.mxu0 %v541_v30 }
 0x1bd   :  { %v704_v55 = vpop.f32.mrf.mxu0 }
 0x1be   :  { %v389_v59 = vadd.f32 %v704_v55, %v387_v56 }
 0x1bf   :  { %v377_v57 = vpop.f32.mrf.mxu0 }
 0x1c0   :  { %v388_v58 = vadd.f32 %v387_v56, %v377_v57 }
 0x1c2   :  { %393 = vperm.xlu0 %722, %v388_v58  }
 0x1c6   :  { %396 = vperm.xlu0 %722, %v389_v59  }
 0x23d   :  { %v394_v61 = vpop.permute.xlu0 %393 }
 0x23e   :  { %v403_v0 = vrot.slane %v394_v61, %v402_v62 }
 0x241   :  { %v397_v63 = vpop.permute.xlu0 %396 }
 0x242   :  { %v407_v1 = vrot.slane %v397_v63, %v402_v62 }
 0x244   :  { %v409_v2 = vsel %vm408_vm2, %v407_v1, %v403_v0 }
 0x245   :  { %v412_v3 = vsel %vm411_vm3, %v409_v2, -inf }
 0x246   :  { %413 = vmax.xlane.f32.xlu1 %v412_v3 }
 0x2cf   :  { %v414_v5 = vpop.xlane.xlu1 %413 }
 0x2d0   :  { %v419_v6 = vrot.slane %v414_v5, %v927_v37  ;;  %v423_v7 = vrot.slane %v414_v5, %v422_v4 }
 0x2d2   :  { %v426_v8 = vsub.f32 %v388_v58, %v419_v6  ;;  %v427_v9 = vsub.f32 %v389_v59, %v423_v7 }
 0x2d4   :  { %v428_v10 = vmul.f32 1.442695, %v426_v8  ;;  %v430_v11 = vmul.f32 1.442695, %v427_v9 }
 0x2d6   :  { %745 = vpow2.f32 %v428_v10 }
 0x2d7   :  { %747 = vpow2.f32 %v430_v11 }
 0x2e3   :  { %v746_v12 = vpop.eup %745 }
 0x2e4   :  { %v748_v13 = vpop.eup %747  ;;  %435 = vperm.xlu1 %723, %v746_v12  }
 0x2e5   :  { %438 = vperm.xlu0 %722, %v748_v13  }
 0x35f   :  { %v436_v14 = vpop.permute.xlu1 %435 }
 0x360   :  { %v439_v15 = vpop.permute.xlu0 %438  ;;  %v443_v18 = vrot.slane %v436_v14, %v402_v62 }
 0x361   :  { %v447_v20 = vrot.slane %v439_v15, %v402_v62 }
 0x363   :  { %v448_v21 = vsel %vm408_vm2, %v447_v20, %v443_v18 }
 0x364   :  { %v450_v22 = vsel %vm411_vm3, %v448_v21, 0.0 }
 0x365   :  { %451 = vadd.xlane.f32.xlu0 %v450_v22 }
 0x3ee   :  { %v452_v23 = vpop.xlane.xlu0 %451 }
 0x3ef   :  { %749 = vrcp.f32 %v452_v23 }
 0x3fc   :  { %v750_v24 = vpop.eup %749 }
 0x3fd   :  { %v462_v25 = vrot.slane %v750_v24, %v422_v4  ;;  %v458_v26 = vrot.slane %v750_v24, %v927_v37 }
 0x3ff   :  { %v466_v27 = vmul.f32 %v748_v13, %v462_v25  ;;  %v465_v28 = vmul.f32 %v746_v12, %v458_v26 }
 0x401   :  { %v468_v29 = vpack.c.bf16 %v466_v27, %v466_v27  ;;  %v467_v32 = vpack.c.bf16 %v465_v28, %v465_v28 }
 0x403   :  { %v528_v31 = vunpack.c.l.b16 %v468_v29  ;;  %v470_v34 = vunpack.c.l.b16 %v467_v32 }
 0x405   :  { %530 = vperm.xlu1 %723, %v528_v31  }
 0x409   :  { %472 = vperm.xlu1 %723, %v470_v34  }
 0x480   :  { %v531_v35 = vpop.permute.xlu1 %530 }
 0x481   :  { %v535_v36 = vrot.slane %v531_v35, %v402_v62 }
 0x483   :  { %v536_v38 = vpack.c.b16 %v535_v36, %v535_v36 }
 0x484   :  { %v473_v37 = vpop.permute.xlu1 %472 }
 0x485   :  { %v477_v39 = vrot.slane %v473_v37, %v402_v62  ;;  %714 = vmatmul.mubr.msk.bf16.vlgmr.msra.gmra.mxu0 %vm479_vm5, %v536_v38 }
 0x487   :  { %v478_v40 = vpack.c.b16 %v477_v39, %v477_v39 }
 0x489   :  { %708 = vmatmul.mubr.msk.bf16.vlgmr.msra.gmra.mxu1 %vm479_vm5, %v478_v40 }
 0x545   :  { %v577_v41 = vpop.f32.mrf.mxu0 }
 0x546   :  { %v588_v42 = vadd.f32 %v584_v17, %v577_v41 }
 0x547   :  { %v715_v43 = vpop.f32.mrf.mxu0 }
 0x548   :  { %v591_v45 = vrot.slane %v588_v42, 7 }
 0x549   :  { %v521_v16 = vpop.f32.mrf.mxu1  ;;  %v580_v44 = vpop.f32.mrf.mxu0 }
 0x54a   :  { %v587_v46 = vadd.f32 %v521_v16, %v903_v19 }
 0x54b   :  { %v709_v47 = vpop.f32.mrf.mxu1  ;;  %v716_v48 = vpop.f32.mrf.mxu0 }
 0x54c   :  { %v592_v49 = vsel %vm408_vm2, %v591_v45, %v587_v46 }
 0x54d   :  { %v524_v50 = vpop.f32.mrf.mxu1  ;;  %594 = vst [vmem:[#allocation3] sm:$0x3] %v592_v49 }
 0x54e   :  { %762 = shalt.err (!%p759_p4)
}
 0x54f   :  { %604 = dma.vmem_to_hbm [thread:$0]  %s602_s24, 32, %s963_s8, [#allocation4]   ;;  %v710_v51 = vpop.f32.mrf.mxu1 }
 0x550   :  { %771 = dma.done.wait [#allocation4], 32  }
 0x551   :  { %772 = vsyncadd [#allocation4], 4294967264 }
 0x552   :  { %608 = vsyncpa [#allocation4], 1 }

</bundles_post_ra>
